<compile_context>
chip_gen: v5e
topology: v5e:2x2
jax: 0.10.0
libtpu: 0.0.40
codegen_flags: <defaults>
</compile_context>

<pallas_src>
import functools

import jax
import jax.numpy as jnp
from jax.experimental import pallas as pl
from jax.experimental.pallas import tpu as pltpu


def _round_up(x, m):
    return ((x + m - 1) // m) * m


def _mlp_kernel(x_ref, *refs, out_widths):
    """refs = (w_0, ..., w_{L-1}, bias_pack, out_ref).

    out_widths: static tuple of padded output widths per layer.
    Weights are bf16; bias pack and accumulation are f32.
    """
    n_layers = len(out_widths)
    out_ref = refs[-1]
    bias_ref = refs[-2]                      # (n_layers, max_padded_width) f32 ref

    h = x_ref[...].astype(jnp.bfloat16)      # (tile_m, C_in) -> bf16 MXU operand
    for i in range(n_layers):                # unrolled: n_layers is a Python int
        w = refs[i][...]                     # (Cin_p, Cout_p) bf16, VMEM-resident
        pout = out_widths[i]
        acc = jnp.dot(h, w, preferred_element_type=jnp.float32)   # f32 accumulate
        acc = acc + bias_ref[i:i + 1, :pout]                      # f32 bias (lane-aligned slice)
        acc = jnp.maximum(acc, 0.0)                               # f32 ReLU
        h = acc.astype(jnp.bfloat16) if i + 1 < n_layers else acc
    out_ref[...] = h.astype(out_ref.dtype)


def prepare_params(params, *, lane=128):
    """Pad / pack weights once (bf16) and biases once (f32). Cache the result."""
    dims = [params[0][0].shape[0]] + [w.shape[1] for (w, _) in params]
    # Layer-0 input width stays unpadded (x is DMA'd as-is); every output width
    # (== next layer's input width) is padded to a 128-lane multiple.
    pdims = [dims[0]] + [_round_up(d, lane) for d in dims[1:]]
    n_layers = len(params)
    max_pd = max(pdims[1:])

    padded_ws, padded_bs = [], []
    for li, (w, b) in enumerate(params):
        pin, pout = pdims[li], pdims[li + 1]
        w_p = jnp.pad(w.astype(jnp.float32),
                      ((0, pin - w.shape[0]), (0, pout - w.shape[1]))
                      ).astype(jnp.bfloat16)
        b_p = jnp.pad(b.astype(jnp.float32).reshape(-1), (0, max_pd - b.shape[-1]))
        padded_ws.append(w_p)
        padded_bs.append(b_p)
    bias_pack = jnp.stack(padded_bs, axis=0)          # (n_layers, max_pd) f32

    return dict(weights=padded_ws, bias_pack=bias_pack,
                dims=tuple(dims), pdims=tuple(pdims))


def mlp_net(x, prepared, *, tile_m=512, min_row_tiles=2):
    """Fused MlpNet forward.  x: (..., channels[0]); prepared: see prepare_params."""
    dims, pdims = prepared["dims"], prepared["pdims"]
    ws, bias_pack = prepared["weights"], prepared["bias_pack"]
    n_layers = len(ws)
    max_pd = bias_pack.shape[-1]

    orig_shape = x.shape
    d_in = dims[0]
    x2 = x.reshape(-1, d_in).astype(jnp.float32)
    m = x2.shape[0]

    # Row tile: large to amortise the ~0.35us/step pipeline overhead, but keep
    # >=2 grid steps when M allows so the "parallel" axis can use both v7x TCs.
    tm = min(tile_m, _round_up(m, 8))
    if m > 8 and pl.cdiv(m, tm) < min_row_tiles:
        tm = max(8, _round_up(pl.cdiv(m, min_row_tiles), 8))
    m_p = _round_up(m, tm)
    if m_p != m:
        x2 = jnp.pad(x2, ((0, m_p - m), (0, 0)))      # only remainder rows, no channel pad
    n_tiles = m_p // tm

    # Explicit VMEM budget: single-buffered weights + bias pack + double-buffered
    # x / out row tiles, with 2x headroom (clamped to [32 MiB, 64 MiB]).
    w_bytes = sum(int(w.size) * 2 for w in ws)                 # bf16
    b_bytes = int(bias_pack.size) * 4
    x_bytes = 2 * tm * d_in * 4
    o_bytes = 2 * tm * pdims[-1] * 4
    vmem_limit = int(min(max(2 * (w_bytes + b_bytes + x_bytes + o_bytes), 32 << 20),
                         64 << 20))

    flops = 2 * m_p * sum(pdims[li] * pdims[li + 1] for li in range(n_layers))
    bytes_accessed = m_p * d_in * 4 + w_bytes + b_bytes + m_p * pdims[-1] * 4
    cost = pl.CostEstimate(flops=flops, transcendentals=0,
                           bytes_accessed=bytes_accessed)

    kernel = functools.partial(_mlp_kernel, out_widths=tuple(pdims[1:]))

    def _call(single_buffer_invariants):
        wkw = ({"pipeline_mode": pl.Buffered(1)} if single_buffer_invariants else {})
        in_specs = [pl.BlockSpec((tm, d_in), lambda i: (i, 0))]          # x row tile
        for li in range(n_layers):                                       # resident weights
            pin, pout = pdims[li], pdims[li + 1]
            in_specs.append(pl.BlockSpec((pin, pout), lambda i: (0, 0), **wkw))
        in_specs.append(pl.BlockSpec((n_layers, max_pd), lambda i: (0, 0), **wkw))

        return pl.pallas_call(
            kernel,
            out_shape=jax.ShapeDtypeStruct((m_p, pdims[-1]), jnp.float32),
            grid_spec=pltpu.PrefetchScalarGridSpec(
                num_scalar_prefetch=0,
                grid=(n_tiles,),
                in_specs=in_specs,
                out_specs=pl.BlockSpec((tm, pdims[-1]), lambda i: (i, 0)),
            ),
            compiler_params=pltpu.CompilerParams(
                dimension_semantics=("parallel",),
                vmem_limit_bytes=vmem_limit,
            ),
            cost_estimate=cost,
        )(x2, *ws, bias_pack)

    try:
        out = _call(True)
    except Exception:
        # Fallback for jax versions where pipeline_mode / Buffered(1) on a
        # pallas_call BlockSpec is not supported: default double-buffering.
        out = _call(False)

    out = out[:m, :dims[-1]]
    return out.reshape(orig_shape[:-1] + (dims[-1],))


def reference_forward(x, params):
    """Pure-JAX (f32) reference of MlpNet.forward (Linear + ReLU stack)."""
    h = x
    for w, b in params:
        h = jnp.maximum(h @ w + b.reshape(-1), 0.0)
    return h


def init_params(key, channels):
    params = []
    ks = jax.random.split(key, 2 * (len(channels) - 1))
    for i in range(len(channels) - 1):
        w = jax.random.normal(ks[2 * i], (channels[i], channels[i + 1]), jnp.float32) * 0.1
        b = jax.random.normal(ks[2 * i + 1], (channels[i + 1],), jnp.float32) * 0.1
        params.append((w, b))
    return params


if __name__ == "__main__":
    # MlpNet(channels=[32, 64, 128, 16]) on x of shape (batch=2, seq=8, 32);
    # wrapper folds (2, 8) into 16 rows -> 2 row tiles of 8.
    channels = [32, 64, 128, 16]

    key = jax.random.PRNGKey(0)
    kx, kp = jax.random.split(key)
    x = jax.random.normal(kx, (2, 8, channels[0]), jnp.float32)
    params = init_params(kp, channels)

    prepared = prepare_params(params)     # pad/pack weights ONCE (bf16) — reuse across calls
    out = mlp_net(x, prepared)
    out = jax.block_until_ready(out)

    ref = reference_forward(x, params)
    assert out.shape == ref.shape
    # bf16 MXU operands with f32 accumulation: relaxed tolerance vs the f32 reference.
    assert jnp.allclose(out, ref, rtol=2e-2, atol=2e-2), "mismatch vs JAX reference"

    print("KERNEL_OK")
</pallas_src>

<mosaic_0001>
module attributes {stable_mosaic.version = 11 : i64} {
  func.func @_mlp_kernel(%arg0: i32, %arg1: memref<8x32xf32, #tpu.memory_space<vmem>>, %arg2: memref<32x128xbf16, #tpu.memory_space<vmem>>, %arg3: memref<128x128xbf16, #tpu.memory_space<vmem>>, %arg4: memref<128x128xbf16, #tpu.memory_space<vmem>>, %arg5: memref<3x128xf32, #tpu.memory_space<vmem>>, %arg6: memref<8x128xf32, #tpu.memory_space<vmem>>) attributes {dimension_semantics = [#tpu.dimension_semantics<parallel>], iteration_bounds = array<i64: 2>, scalar_prefetch = 0 : i64, scratch_operands = 0 : i64, tpu.core_type = #tpu.core_type<tc>, window_params = [{transform_indices = @transform_0, window_bounds = array<i64: 8, 32>}, {pipeline_mode = #tpu.pipeline_mode<synchronous>, transform_indices = @transform_1, window_bounds = array<i64: 32, 128>}, {pipeline_mode = #tpu.pipeline_mode<synchronous>, transform_indices = @transform_2, window_bounds = array<i64: 128, 128>}, {pipeline_mode = #tpu.pipeline_mode<synchronous>, transform_indices = @transform_3, window_bounds = array<i64: 128, 128>}, {pipeline_mode = #tpu.pipeline_mode<synchronous>, transform_indices = @transform_4, window_bounds = array<i64: 3, 128>}, {transform_indices = @transform_5, window_bounds = array<i64: 8, 128>}]} {
    %c0 = arith.constant 0 : index
    %c0_0 = arith.constant 0 : index
    %0 = vector.load %arg1[%c0, %c0_0] : memref<8x32xf32, #tpu.memory_space<vmem>>, vector<8x32xf32>
    %1 = arith.truncf %0 : vector<8x32xf32> to vector<8x32xbf16>
    %c0_1 = arith.constant 0 : index
    %c0_2 = arith.constant 0 : index
    %2 = vector.load %arg2[%c0_1, %c0_2] : memref<32x128xbf16, #tpu.memory_space<vmem>>, vector<32x128xbf16>
    %cst = arith.constant dense<0.000000e+00> : vector<8x128xf32>
    %3 = tpu.matmul %1, %2, %cst {dimension_numbers = #tpu.dot_dimension_numbers<[1], [0], [0], [1], [0, 0, 1, 1], [], []>} : vector<8x32xbf16>, vector<32x128xbf16>, vector<8x128xf32> -> vector<8x128xf32>
    %c0_3 = arith.constant 0 : index
    %c0_4 = arith.constant 0 : index
    %4 = vector.load %arg5[%c0_3, %c0_4] : memref<3x128xf32, #tpu.memory_space<vmem>>, vector<1x128xf32>
    %5 = vector.broadcast %4 : vector<1x128xf32> to vector<8x128xf32>
    %6 = arith.addf %3, %5 : vector<8x128xf32>
    %cst_5 = arith.constant 0.000000e+00 : f32
    %7 = vector.broadcast %cst_5 : f32 to vector<8x128xf32>
    %8 = arith.maximumf %6, %7 : vector<8x128xf32>
    %9 = arith.truncf %8 : vector<8x128xf32> to vector<8x128xbf16>
    %c0_6 = arith.constant 0 : index
    %c0_7 = arith.constant 0 : index
    %10 = vector.load %arg3[%c0_6, %c0_7] : memref<128x128xbf16, #tpu.memory_space<vmem>>, vector<128x128xbf16>
    %cst_8 = arith.constant dense<0.000000e+00> : vector<8x128xf32>
    %11 = tpu.matmul %9, %10, %cst_8 {dimension_numbers = #tpu.dot_dimension_numbers<[1], [0], [0], [1], [0, 0, 1, 1], [], []>} : vector<8x128xbf16>, vector<128x128xbf16>, vector<8x128xf32> -> vector<8x128xf32>
    %c1 = arith.constant 1 : index
    %c0_9 = arith.constant 0 : index
    %12 = vector.load %arg5[%c1, %c0_9] : memref<3x128xf32, #tpu.memory_space<vmem>>, vector<1x128xf32>
    %13 = vector.broadcast %12 : vector<1x128xf32> to vector<8x128xf32>
    %14 = arith.addf %11, %13 : vector<8x128xf32>
    %cst_10 = arith.constant 0.000000e+00 : f32
    %15 = vector.broadcast %cst_10 : f32 to vector<8x128xf32>
    %16 = arith.maximumf %14, %15 : vector<8x128xf32>
    %17 = arith.truncf %16 : vector<8x128xf32> to vector<8x128xbf16>
    %c0_11 = arith.constant 0 : index
    %c0_12 = arith.constant 0 : index
    %18 = vector.load %arg4[%c0_11, %c0_12] : memref<128x128xbf16, #tpu.memory_space<vmem>>, vector<128x128xbf16>
    %cst_13 = arith.constant dense<0.000000e+00> : vector<8x128xf32>
    %19 = tpu.matmul %17, %18, %cst_13 {dimension_numbers = #tpu.dot_dimension_numbers<[1], [0], [0], [1], [0, 0, 1, 1], [], []>} : vector<8x128xbf16>, vector<128x128xbf16>, vector<8x128xf32> -> vector<8x128xf32>
    %c2 = arith.constant 2 : index
    %c0_14 = arith.constant 0 : index
    %20 = vector.load %arg5[%c2, %c0_14] : memref<3x128xf32, #tpu.memory_space<vmem>>, vector<1x128xf32>
    %21 = vector.broadcast %20 : vector<1x128xf32> to vector<8x128xf32>
    %22 = arith.addf %19, %21 : vector<8x128xf32>
    %cst_15 = arith.constant 0.000000e+00 : f32
    %23 = vector.broadcast %cst_15 : f32 to vector<8x128xf32>
    %24 = arith.maximumf %22, %23 : vector<8x128xf32>
    %c0_16 = arith.constant 0 : index
    %c0_17 = arith.constant 0 : index
    %25 = vector.load %arg6[%c0_16, %c0_17] : memref<8x128xf32, #tpu.memory_space<vmem>>, vector<8x128xf32>
    tpu.vector_store %arg6[%c0_16, %c0_17], %24 {strides = array<i32>} : memref<8x128xf32, #tpu.memory_space<vmem>>, vector<8x128xf32>,
    return
  }
  func.func @transform_0(%arg0: i32) -> (i32, i32) {
    %c0_i32 = arith.constant 0 : i32
    %c0_i32_0 = arith.constant 0 : i32
    return %arg0, %c0_i32 : i32, i32
  }
  func.func @transform_1(%arg0: i32) -> (i32, i32) {
    %c0_i32 = arith.constant 0 : i32
    %c0_i32_0 = arith.constant 0 : i32
    %c0_i32_1 = arith.constant 0 : i32
    return %c0_i32, %c0_i32_0 : i32, i32
  }
  func.func @transform_2(%arg0: i32) -> (i32, i32) {
    %c0_i32 = arith.constant 0 : i32
    %c0_i32_0 = arith.constant 0 : i32
    %c0_i32_1 = arith.constant 0 : i32
    return %c0_i32, %c0_i32_0 : i32, i32
  }
  func.func @transform_3(%arg0: i32) -> (i32, i32) {
    %c0_i32 = arith.constant 0 : i32
    %c0_i32_0 = arith.constant 0 : i32
    %c0_i32_1 = arith.constant 0 : i32
    return %c0_i32, %c0_i32_0 : i32, i32
  }
  func.func @transform_4(%arg0: i32) -> (i32, i32) {
    %c0_i32 = arith.constant 0 : i32
    %c0_i32_0 = arith.constant 0 : i32
    %c0_i32_1 = arith.constant 0 : i32
    return %c0_i32, %c0_i32_0 : i32, i32
  }
  func.func @transform_5(%arg0: i32) -> (i32, i32) {
    %c0_i32 = arith.constant 0 : i32
    %c0_i32_0 = arith.constant 0 : i32
    return %arg0, %c0_i32 : i32, i32
  }
}

module attributes {stable_mosaic.version = 11 : i64} {
  func.func @_mlp_kernel(%arg0: i32, %arg1: memref<8x32xf32, #tpu.memory_space<vmem>>, %arg2: memref<32x128xbf16, #tpu.memory_space<vmem>>, %arg3: memref<128x128xbf16, #tpu.memory_space<vmem>>, %arg4: memref<128x128xbf16, #tpu.memory_space<vmem>>, %arg5: memref<3x128xf32, #tpu.memory_space<vmem>>, %arg6: memref<8x128xf32, #tpu.memory_space<vmem>>) attributes {dimension_semantics = [#tpu.dimension_semantics<parallel>], iteration_bounds = array<i64: 2>, scalar_prefetch = 0 : i64, scratch_operands = 0 : i64, tpu.core_type = #tpu.core_type<tc>, window_params = [{transform_indices = @transform_0, window_bounds = array<i64: 8, 32>}, {pipeline_mode = #tpu.pipeline_mode<synchronous>, transform_indices = @transform_1, window_bounds = array<i64: 32, 128>}, {pipeline_mode = #tpu.pipeline_mode<synchronous>, transform_indices = @transform_2, window_bounds = array<i64: 128, 128>}, {pipeline_mode = #tpu.pipeline_mode<synchronous>, transform_indices = @transform_3, window_bounds = array<i64: 128, 128>}, {pipeline_mode = #tpu.pipeline_mode<synchronous>, transform_indices = @transform_4, window_bounds = array<i64: 3, 128>}, {transform_indices = @transform_5, window_bounds = array<i64: 8, 128>}]} {
    %c0 = arith.constant 0 : index
    %c0_0 = arith.constant 0 : index
    %0 = vector.load %arg1[%c0, %c0_0] : memref<8x32xf32, #tpu.memory_space<vmem>>, vector<8x32xf32>
    %1 = arith.truncf %0 : vector<8x32xf32> to vector<8x32xbf16>
    %c0_1 = arith.constant 0 : index
    %c0_2 = arith.constant 0 : index
    %2 = vector.load %arg2[%c0_1, %c0_2] : memref<32x128xbf16, #tpu.memory_space<vmem>>, vector<32x128xbf16>
    %cst = arith.constant dense<0.000000e+00> : vector<8x128xf32>
    %3 = tpu.matmul %1, %2, %cst {dimension_numbers = #tpu.dot_dimension_numbers<[1], [0], [0], [1], [0, 0, 1, 1], [], []>} : vector<8x32xbf16>, vector<32x128xbf16>, vector<8x128xf32> -> vector<8x128xf32>
    %c0_3 = arith.constant 0 : index
    %c0_4 = arith.constant 0 : index
    %4 = vector.load %arg5[%c0_3, %c0_4] : memref<3x128xf32, #tpu.memory_space<vmem>>, vector<1x128xf32>
    %5 = vector.broadcast %4 : vector<1x128xf32> to vector<8x128xf32>
    %6 = arith.addf %3, %5 : vector<8x128xf32>
    %cst_5 = arith.constant 0.000000e+00 : f32
    %7 = vector.broadcast %cst_5 : f32 to vector<8x128xf32>
    %8 = arith.maximumf %6, %7 : vector<8x128xf32>
    %9 = arith.truncf %8 : vector<8x128xf32> to vector<8x128xbf16>
    %c0_6 = arith.constant 0 : index
    %c0_7 = arith.constant 0 : index
    %10 = vector.load %arg3[%c0_6, %c0_7] : memref<128x128xbf16, #tpu.memory_space<vmem>>, vector<128x128xbf16>
    %cst_8 = arith.constant dense<0.000000e+00> : vector<8x128xf32>
    %11 = tpu.matmul %9, %10, %cst_8 {dimension_numbers = #tpu.dot_dimension_numbers<[1], [0], [0], [1], [0, 0, 1, 1], [], []>} : vector<8x128xbf16>, vector<128x128xbf16>, vector<8x128xf32> -> vector<8x128xf32>
    %c1 = arith.constant 1 : index
    %c0_9 = arith.constant 0 : index
    %12 = vector.load %arg5[%c1, %c0_9] : memref<3x128xf32, #tpu.memory_space<vmem>>, vector<1x128xf32>
    %13 = vector.broadcast %12 : vector<1x128xf32> to vector<8x128xf32>
    %14 = arith.addf %11, %13 : vector<8x128xf32>
    %cst_10 = arith.constant 0.000000e+00 : f32
    %15 = vector.broadcast %cst_10 : f32 to vector<8x128xf32>
    %16 = arith.maximumf %14, %15 : vector<8x128xf32>
    %17 = arith.truncf %16 : vector<8x128xf32> to vector<8x128xbf16>
    %c0_11 = arith.constant 0 : index
    %c0_12 = arith.constant 0 : index
    %18 = vector.load %arg4[%c0_11, %c0_12] : memref<128x128xbf16, #tpu.memory_space<vmem>>, vector<128x128xbf16>
    %cst_13 = arith.constant dense<0.000000e+00> : vector<8x128xf32>
    %19 = tpu.matmul %17, %18, %cst_13 {dimension_numbers = #tpu.dot_dimension_numbers<[1], [0], [0], [1], [0, 0, 1, 1], [], []>} : vector<8x128xbf16>, vector<128x128xbf16>, vector<8x128xf32> -> vector<8x128xf32>
    %c2 = arith.constant 2 : index
    %c0_14 = arith.constant 0 : index
    %20 = vector.load %arg5[%c2, %c0_14] : memref<3x128xf32, #tpu.memory_space<vmem>>, vector<1x128xf32>
    %21 = vector.broadcast %20 : vector<1x128xf32> to vector<8x128xf32>
    %22 = arith.addf %19, %21 : vector<8x128xf32>
    %cst_15 = arith.constant 0.000000e+00 : f32
    %23 = vector.broadcast %cst_15 : f32 to vector<8x128xf32>
    %24 = arith.maximumf %22, %23 : vector<8x128xf32>
    %c0_16 = arith.constant 0 : index
    %c0_17 = arith.constant 0 : index
    %25 = vector.load %arg6[%c0_16, %c0_17] : memref<8x128xf32, #tpu.memory_space<vmem>>, vector<8x128xf32>
    tpu.vector_store %arg6[%c0_16, %c0_17], %24 {strides = array<i32>} : memref<8x128xf32, #tpu.memory_space<vmem>>, vector<8x128xf32>,
    return
  }
  func.func @transform_0(%arg0: i32) -> (i32, i32) {
    %c0_i32 = arith.constant 0 : i32
    %c0_i32_0 = arith.constant 0 : i32
    return %arg0, %c0_i32 : i32, i32
  }
  func.func @transform_1(%arg0: i32) -> (i32, i32) {
    %c0_i32 = arith.constant 0 : i32
    %c0_i32_0 = arith.constant 0 : i32
    %c0_i32_1 = arith.constant 0 : i32
    return %c0_i32, %c0_i32_0 : i32, i32
  }
  func.func @transform_2(%arg0: i32) -> (i32, i32) {
    %c0_i32 = arith.constant 0 : i32
    %c0_i32_0 = arith.constant 0 : i32
    %c0_i32_1 = arith.constant 0 : i32
    return %c0_i32, %c0_i32_0 : i32, i32
  }
  func.func @transform_3(%arg0: i32) -> (i32, i32) {
    %c0_i32 = arith.constant 0 : i32
    %c0_i32_0 = arith.constant 0 : i32
    %c0_i32_1 = arith.constant 0 : i32
    return %c0_i32, %c0_i32_0 : i32, i32
  }
  func.func @transform_4(%arg0: i32) -> (i32, i32) {
    %c0_i32 = arith.constant 0 : i32
    %c0_i32_0 = arith.constant 0 : i32
    %c0_i32_1 = arith.constant 0 : i32
    return %c0_i32, %c0_i32_0 : i32, i32
  }
  func.func @transform_5(%arg0: i32) -> (i32, i32) {
    %c0_i32 = arith.constant 0 : i32
    %c0_i32_0 = arith.constant 0 : i32
    return %arg0, %c0_i32 : i32, i32
  }
}

</mosaic_0001>

<bundles_post_ra>
// kernel: tpu_custom_call.1
= control target key start
LH: loop header
LB: loop body
LE: loop exit
PB: predicated region body
PF: predicated region fallthrough
CT: control target
= control target key end

     0   :  { %10 = vsyncpa [#allocation3], 0  ;;  %s1268_s0 = inlined_call_operand.hbm [shape: f32[16,32], index: 0, kind: input, shape index: {}]   ;;  %s1269_s1 = inlined_call_operand.hbm [shape: bf16[32,128], index: 1, kind: input, shape index: {}]   ;;  %s1270_s2 = inlined_call_operand.hbm [shape: bf16[128,128], index: 2, kind: input, shape index: {}]   ;;  %s1271_s3 = inlined_call_operand.hbm [shape: bf16[128,128], index: 3, kind: input, shape index: {}]   ;;  %s1272_s4 = inlined_call_operand.hbm [shape: f32[3,128], index: 4, kind: input, shape index: {}]   ;;  %s1273_s5 = inlined_call_operand.hbm [shape: f32[16,128], index: 5, kind: output, shape index: {}]  }
   0x1   :  { %12 = vsyncpa [#allocation3 + $0x1], 0 }
   0x2   :  { %13 = vsyncpa [#allocation6], 0 }
   0x3   :  { %14 = vsyncpa [#allocation9], 0 }
   0x4   :  { %15 = vsyncpa [#allocation4], 0 }
   0x5   :  { %17 = vsyncpa [#allocation4 + $0x1], 0  ;;  %s1097_s18 = smov 0   ;;  %s1099_s19 = smov 0  }
   0x6   :  { %s1101_s20 = smov 0   ;;  %s1103_s21 = smov 0  }
   0x7 LB: > { %s175_s24 = sshll.u32 %s1269_s1, 4  ;;  %s1121_s25 = sadd.s32 4294967295, %s1059_s21   ;;  %s1059_s21 = sphi %s1103_s21, %s1285_s21   ;;  %s1055_s20 = sphi %s1101_s20, %s1284_s20   ;;  %s1051_s19 = sphi %s1099_s19, %s1283_s19   ;;  %s1047_s18 = sphi %s1097_s18, %s1282_s18   ;;  %s176_s24 = int_to_ptr.hbm [resolvable:$true] %s175_s24 }
   0x8   : > { %p633_p0 = scmp.ge.s32.totalorder %s1059_s21, 1  ;;  %p44_p1 = scmp.eq.s32.totalorder %s1121_s25, 0 }
   0x9   : > { %p164_p2 = scmp.lt.s32.totalorder %s1059_s21, 3  ;;  %s1061_s27 = smov [#allocation5]  }
   0xa   : > { %s177_s28 = sshll.u32 %s1061_s27, 4  ;;  %s203_s6 = sshll.u32 %s1271_s3, 4  ;;  %s178_s28 = int_to_ptr.vmem [resolvable:$true] %s177_s28  ;;  %s204_s6 = int_to_ptr.hbm [resolvable:$true] %s203_s6 }
   0xb   : > { %p1126_p3 = pnand %p633_p0, %p164_p2  ;;  %s189_s10 = sshll.u32 %s1270_s2, 4  ;;  %s190_s10 = int_to_ptr.hbm [resolvable:$true] %s189_s10 }
   0xc   : > { %s1062_s11 = smov [#allocation8]   ;;  %s1063_s13 = smov 64  }
   0xd   : > { %p763_p4 = pneg %p1126_p3  ;;  %s205_s12 = sshll.u32 %s1062_s11, 4  ;;  %s206_s12 = int_to_ptr.vmem [resolvable:$true] %s205_s12 }
   0xe   : > { %s1064_s14 = smov 4   ;;  %s218_s17 = sshll.u32 %s1272_s4, 4  ;;  %s219_s17 = int_to_ptr.hbm [resolvable:$true] %s218_s17 }
   0xf   : > { %p1138_p6 = pnand %p763_p4, %p44_p1  ;;  %s1065_s22 = smov [#allocation7]  }
  0x10   : > { %s191_s23 = sshll.u32 %s1065_s22, 4  ;;  %s1158_s29 = sadd.s32 1, %s1059_s21   ;;  %s192_s23 = int_to_ptr.vmem [resolvable:$true] %s191_s23 }
  0x11   : > { %766 = dma.hbm_to_vmem [thread:$0]  (!%p1138_p6), %s176_s24, 256, %s178_s28, [#allocation6], %s1063_s13, %s1063_s13, %s1064_s14  }
  0x12   : > { %772 = dma.hbm_to_vmem [thread:$0]  (!%p1138_p6), %s204_s6, 1024, %s206_s12, [#allocation9], %s1063_s13, %s1063_s13, %s1064_s14  }
  0x13   : > { %769 = dma.hbm_to_vmem [thread:$0]  (!%p1138_p6), %s190_s10, 1024, %s192_s23, [#allocation6], %s1063_s13, %s1063_s13, %s1064_s14  }
  0x14   : > { %s1066_s24 = smov [#allocation10]   ;;  %s632_s28 = sadd.s32 4294967294, %s1059_s21  }
  0x15   : > { %s220_s27 = sshll.u32 %s1066_s24, 4  ;;  %s27_s30 = ssub.s32 %s1059_s21, %s1158_s29  ;;  %s221_s27 = int_to_ptr.vmem [resolvable:$true] %s220_s27 }
  0x16   : > { %775 = dma.hbm_to_vmem [thread:$0]  (!%p1138_p6), %s219_s17, 64, %s221_s27, [#allocation9]  }
  0x17   : > { %s30_s6 = sadd.s32 1, %s1055_s20  ;;  %p28_p7 = scmp.eq.s32.totalorder %s27_s30, 0 }
  0x18   : > { %p37_p8 = scmp.ne.s32.totalorder %s1055_s20, %s1051_s19  ;;  %p38_p9 = scmp.eq.s32.totalorder %s1059_s21, 0 }
  0x19   : > { %p43_p10 = scmp.ne.s32.totalorder %s1051_s19, %s1047_s18  ;;  %p151_p13 = scmp.eq.s32.totalorder %s1121_s25, 1 }
  0x1a   : > { %s1169_s8 = scalar_select %p28_p7, %s1055_s20, %s30_s6  }
  0x1b   : > { %p1171_p11 = por %p38_p9, %p37_p8  ;;  %p1177_p12 = por %p44_p1, %p43_p10 }
  0x1c   : > { %p157_p0 = scmp.eq.s32.totalorder %s632_s28, 1  ;;  %p788_p2 = scmp.lt.s32.totalorder %s1059_s21, 2 }
  0x1d   : > { %s231_s10 = sand.u32 1, %s1055_s20   ;;  %p1184_p4 = por %p151_p13, %p37_p8 }
  0x1e   : > { %p1188_p6 = por %p157_p0, %p43_p10  ;;  %s639_s13 = sshll.u32 %s231_s10, 3 }
  0x1f   : > { %s640_s14 = sshll.u32 %s1059_s21, 3  ;;  %s235_s22 = scalar_lea.vmem [#allocation2], %s639_s13 }
  0x20   : > { %s239_s17 = scalar_lea.hbm %s1268_s0, %s640_s14  ;;  %s243_s23 = sshll.u32 %s235_s22, 4  ;;  %s244_s23 = int_to_ptr.vmem [resolvable:$true] %s243_s23 }
  0x21   : > { %s241_s24 = sshll.u32 %s239_s17, 4  ;;  %p1198_p7 = pnand %p788_p2, %p1171_p11  ;;  %s242_s24 = int_to_ptr.hbm [resolvable:$true] %s241_s24 }
  0x22   : > { %s232_s28 = scalar_lea.sflag [#allocation3], %s231_s10  ;;  %s955_s30 = sshra.s32 %s242_s24, 4  ;;  %s956_s30 = int_to_ptr.hbm [resolvable:$true] %s955_s30 }
  0x23   : > { %s957_s6 = scalar_lea.hbm %s956_s30, 8  ;;  %p959_p9 = pneg %p1198_p7 }
  0x24   : > { %p958_p8 = scmp.ne.s32.totalorder %s956_s30, %s957_s6  ;;  %s962_s15 = scalar_lea.hbm %s1268_s0, 16 }
  0x25   : > { %p963_p11 = scmp.lt.s32.totalorder %s956_s30, %s1268_s0  ;;  %p964_p0 = scmp.lt.s32.totalorder %s962_s15, %s957_s6 }
  0x26   : > { %p960_p10 = pnand %p959_p9, %p958_p8 }
  0x27   : > { %p965_p2 = por %p964_p0, %p963_p11 }
  0x28   : > { %p961_p13 = pneg %p960_p10 }
  0x2a   : > { %p966_p5 = pnand %p965_p2, %p961_p13 }
  0x2c   : > { %969 = shalt.err (!%p966_p5)
}
  0x2d   : > { %779 = dma.hbm_to_vmem [thread:$0]  (!%p1198_p7), %s242_s24, 128, %s244_s23, %s232_s28  }
  0x2e   : > { %252 = sbr.rel (%p1126_p3) target bundleno = 468 (0x1d4), region = 40  ;;  %s1215_s10 = sand.u32 (!%p1126_p3), 1, %s1051_s19  }
  0x2f   : > { %s642_s17 = sshll.u32 (!%p1126_p3), %s1215_s10, 3  ;;  %s255_s22 = scalar_lea.sflag (!%p1126_p3), [#allocation3], %s1215_s10 }
  0x30   : > { %s258_s30 = scalar_lea.vmem (!%p1126_p3), [#allocation2], %s642_s17 }
  0x33   : > { %1030 = dma.done.wait (%p1177_p12), %s255_s22, 128  }
  0x34   : > { %1032 = vsyncadd (%p1177_p12), %s255_s22, 4294967168 }
  0x35   : > { %1034 = dma.done.wait (%p44_p1), [#allocation6], 1280  }
  0x36   : > { %1036 = vsyncadd (%p44_p1), [#allocation6], 4294966016 }
  0x37   : > { %1038 = dma.done.wait (%p44_p1), [#allocation9], 1088  }
  0x38   : > { %1040 = vsyncadd (%p44_p1), [#allocation9], 4294966208  ;;  %v726_v0 = vld [vmem:[#allocation5 + $0x8] sm:$0xff]  ;;  %v725_v2 = vld [vmem:[#allocation5] sm:$0xff]  ;;  %vm327_vm0 = vcmask 261120   ;;  %s722_s26 = sshll.u32 %s1121_s25, 3 }
  0x39   : > { %v734_v1 = vld [vmem:[#allocation7 + $0x38] sm:$0xff]  ;;  %337 = vmatpush.bf16.msra.mxu0 %v726_v0  ;;  %v307_v3 = vld [vmem:[%s258_s30] sm:$0xff]  ;;  %v733_v4 = vld [vmem:[#allocation7 + $0x30] sm:$0xff]  ;;  %s519_s24 = scalar_lea.hbm %s1273_s5, %s722_s26  ;;  %s305_s27 = scalar_lea.vmem [#allocation11], %s642_s17 }
  0x3a   : > { %412 = vmatpush.bf16.msra.mxu1 %v734_v1  ;;  %v308_v5 = vpack.c.bf16 %v307_v3, %v307_v3  ;;  %v732_v6 = vld [vmem:[#allocation7 + $0x28] sm:$0xff]  ;;  %v731_v7 = vld [vmem:[#allocation7 + $0x20] sm:$0xff]  ;;  %v730_v8 = vld [vmem:[#allocation7 + $0x18] sm:$0xff]  ;;  %s521_s28 = sshll.u32 %s305_s27, 4  ;;  %s523_s6 = sshll.u32 %s519_s24, 4  ;;  %s522_s28 = int_to_ptr.vmem [resolvable:$true] %s521_s28  ;;  %s524_s6 = int_to_ptr.hbm [resolvable:$true] %s523_s6 }
  0x3b   : > { %v729_v9 = vld [vmem:[#allocation7 + $0x10] sm:$0xff]  ;;  %v728_v10 = vld [vmem:[#allocation7 + $0x8] sm:$0xff]  ;;  %v727_v11 = vld [vmem:[#allocation7] sm:$0xff]  ;;  %s509_s13 = scalar_lea.sflag [#allocation4], %s1215_s10  ;;  %s999_s14 = sshra.s32 %s524_s6, 4  ;;  %s1000_s14 = int_to_ptr.hbm [resolvable:$true] %s999_s14 }
  0x3c   : > { %v742_v12 = vld [vmem:[#allocation8 + $0x38] sm:$0xff]  ;;  %v741_v13 = vld [vmem:[#allocation8 + $0x30] sm:$0xff]  ;;  %v740_v14 = vld [vmem:[#allocation8 + $0x28] sm:$0xff]  ;;  %s1001_s25 = scalar_lea.hbm %s1000_s14, 8  ;;  %s1005_s9 = scalar_lea.hbm %s1273_s5, 16 }
  0x3d   : > { %338 = vmatpush.bf16.msra.mxu0 %v725_v2  ;;  %493 = vmatpush.bf16.msra.mxu2 %v742_v12  ;;  %v739_v15 = vld [vmem:[#allocation8 + $0x20] sm:$0xff]  ;;  %v738_v16 = vld [vmem:[#allocation8 + $0x18] sm:$0xff]  ;;  %v737_v17 = vld [vmem:[#allocation8 + $0x10] sm:$0xff]  ;;  %p1002_p1 = scmp.ne.s32.totalorder %s1000_s14, %s1001_s25  ;;  %p1006_p12 = scmp.lt.s32.totalorder %s1000_s14, %s1273_s5 }
  0x3e   : > { %413 = vmatpush.bf16.msra.mxu1 %v733_v4  ;;  %v832_v18 = vld [vmem:[#allocation10] ss:$0 sm:$0xff]  ;;  %v736_v24 = vld [vmem:[#allocation8 + $0x8] sm:$0xff]  ;;  %v833_v26 = vld [vmem:[#allocation10 + $0x1] ss:$0 sm:$0xff]  ;;  %p1007_p7 = scmp.lt.s32.totalorder %s1005_s9, %s1001_s25 }
  0x3f   : > { %v735_v25 = vld [vmem:[#allocation8] sm:$0xff]  ;;  %p1003_p3 = pnand %p1002_p1, %p1184_p4 }
  0x40   : > { %656 = vmatmul.msk.bf16.vlgmr.msra.gmra.mxu0 %vm327_vm0, %v308_v5  ;;  %v834_v32 = vld [vmem:[#allocation10 + $0x2] ss:$0 sm:$0xff]  ;;  %p1008_p8 = por %p1007_p7, %p1006_p12 }
  0x41   : > { %494 = vmatpush.bf16.msra.mxu2 %v741_v13  ;;  %p1004_p5 = pneg %p1003_p3 }
  0x42   : > { %414 = vmatpush.bf16.msra.mxu1 %v732_v6 }
  0x43   : > { %p1009_p9 = pnand %p1008_p8, %p1004_p5 }
  0x45   : > { %495 = vmatpush.bf16.msra.mxu2 %v740_v14 }
  0x46   : > { %415 = vmatpush.bf16.msra.mxu1 %v731_v7 }
  0x49   : > { %496 = vmatpush.bf16.msra.mxu2 %v739_v15 }
  0x4a   : > { %416 = vmatpush.bf16.msra.mxu1 %v730_v8 }
  0x4d   : > { %497 = vmatpush.bf16.msra.mxu2 %v738_v16 }
  0x4e   : > { %417 = vmatpush.bf16.msra.mxu1 %v729_v9 }
  0x51   : > { %498 = vmatpush.bf16.msra.mxu2 %v737_v17 }
  0x52   : > { %418 = vmatpush.bf16.msra.mxu1 %v728_v10 }
  0x55   : > { %499 = vmatpush.bf16.msra.mxu2 %v736_v24 }
  0x56   : > { %419 = vmatpush.bf16.msra.mxu1 %v727_v11 }
  0x59   : > { %500 = vmatpush.bf16.msra.mxu2 %v735_v25 }
  0xbd   : > { %v340_v19 = vpop.f32.mrf.mxu0 }
  0xbe   : > { %v341_v20 = vadd.f32 %v832_v18, %v340_v19 }
  0xc0   : > { %v344_v21 = vmax.f32 %v341_v20, 0.0 }
  0xc2   : > { %v345_v22 = vpack.c.bf16 %v344_v21, %v344_v21 }
  0xc4   : > { %420 = vmatmul.bf16.vlgmr.msra.gmra.mxu1 %v345_v22 }
  0xc5   : > { %v342_v23 = vpop.f32.mrf.mxu0 }
 0x141   : > { %v421_v27 = vpop.f32.mrf.mxu1 }
 0x142   : > { %v422_v28 = vadd.f32 %v833_v26, %v421_v27 }
 0x144   : > { %v425_v29 = vmax.f32 %v422_v28, 0.0 }
 0x146   : > { %v426_v30 = vpack.c.bf16 %v425_v29, %v425_v29 }
 0x148   : > { %501 = vmatmul.bf16.vlgmr.msra.gmra.mxu2 %v426_v30 }
 0x149   : > { %v423_v31 = vpop.f32.mrf.mxu1 }
 0x1cb   : > { %v502_v33 = vpop.f32.mrf.mxu2 }
 0x1cc   : > { %v503_v34 = vadd.f32 %v834_v32, %v502_v33 }
 0x1ce   : > { %v506_v35 = vmax.f32 %v503_v34, 0.0 }
 0x1d0   : > { %507 = vst [vmem:[%s305_s27] sm:$0xff] %v506_v35 }
 0x1d1   : > { %1012 = shalt.err (!%p1009_p9)
}
 0x1d2   : > { %761 = dma.vmem_to_hbm [thread:$0]  (%p1184_p4), %s522_s28, 128, %s524_s6, %s509_s13  }
 0x1d3   : > { %v504_v36 = vpop.f32.mrf.mxu2 }
 0x1d4 PF: > { %s535_s10 = sand.u32 1, %s1047_s18   ;;  %p1281_p10 = scmp.ge.s32.totalorder %s1059_s21, 2 }
 0x1d5   : > { %s536_s30 = scalar_lea.sflag [#allocation4], %s535_s10 }
 0x1d6   : > { %p781_p13 = pnand %p1281_p10, %p1188_p6 }
 0x1d8   : > { %p782_p11 = pneg %p781_p13 }
 0x1da   : > { %1042 = dma.done.wait (%p782_p11), %s536_s30, 128  }
 0x1db   : > { %1044 = vsyncadd (%p782_p11), %s536_s30, 4294967168  ;;  %p20_p0 = scmp.ge.s32.totalorder %s1158_s29, 4   ;;  %s1282_s18 = smov %s1051_s19 }
 0x1dc   : > { %s1283_s19 = smov %s1055_s20  ;;  %s1284_s20 = smov %s1169_s8 }
 0x1dd   : > { %s1285_s21 = smov %s1158_s29  ;;  %22 = sbr.rel (!%p20_p0) target bundleno = 7 (0x7), region = 101 }
 0x1e2   :  { %542 = vsyncpa [#allocation3], 1 }
 0x1e3   :  { %544 = vsyncpa [#allocation3 + $0x1], 1 }
 0x1e4   :  { %545 = vsyncpa [#allocation6], 1 }
 0x1e5   :  { %546 = vsyncpa [#allocation9], 1 }
 0x1e6   :  { %547 = vsyncpa [#allocation4], 1 }
 0x1e7   :  { %549 = vsyncpa [#allocation4 + $0x1], 1 }

// kernel: tpu_custom_call.1
= control target key start
LH: loop header
LB: loop body
LE: loop exit
PB: predicated region body
PF: predicated region fallthrough
CT: control target
= control target key end

     0   :  { %10 = vsyncpa [#allocation3], 0  ;;  %s1268_s0 = inlined_call_operand.hbm [shape: f32[16,32], index: 0, kind: input, shape index: {}]   ;;  %s1269_s1 = inlined_call_operand.hbm [shape: bf16[32,128], index: 1, kind: input, shape index: {}]   ;;  %s1270_s2 = inlined_call_operand.hbm [shape: bf16[128,128], index: 2, kind: input, shape index: {}]   ;;  %s1271_s3 = inlined_call_operand.hbm [shape: bf16[128,128], index: 3, kind: input, shape index: {}]   ;;  %s1272_s4 = inlined_call_operand.hbm [shape: f32[3,128], index: 4, kind: input, shape index: {}]   ;;  %s1273_s5 = inlined_call_operand.hbm [shape: f32[16,128], index: 5, kind: output, shape index: {}]  }
   0x1   :  { %12 = vsyncpa [#allocation3 + $0x1], 0 }
   0x2   :  { %13 = vsyncpa [#allocation6], 0 }
   0x3   :  { %14 = vsyncpa [#allocation9], 0 }
   0x4   :  { %15 = vsyncpa [#allocation4], 0 }
   0x5   :  { %17 = vsyncpa [#allocation4 + $0x1], 0  ;;  %s1097_s18 = smov 0   ;;  %s1099_s19 = smov 0  }
   0x6   :  { %s1101_s20 = smov 0   ;;  %s1103_s21 = smov 0  }
   0x7 LB: > { %s175_s24 = sshll.u32 %s1269_s1, 4  ;;  %s1121_s25 = sadd.s32 4294967295, %s1059_s21   ;;  %s1059_s21 = sphi %s1103_s21, %s1285_s21   ;;  %s1055_s20 = sphi %s1101_s20, %s1284_s20   ;;  %s1051_s19 = sphi %s1099_s19, %s1283_s19   ;;  %s1047_s18 = sphi %s1097_s18, %s1282_s18   ;;  %s176_s24 = int_to_ptr.hbm [resolvable:$true] %s175_s24 }
   0x8   : > { %p633_p0 = scmp.ge.s32.totalorder %s1059_s21, 1  ;;  %p44_p1 = scmp.eq.s32.totalorder %s1121_s25, 0 }
   0x9   : > { %p164_p2 = scmp.lt.s32.totalorder %s1059_s21, 3  ;;  %s1061_s27 = smov [#allocation5]  }
   0xa   : > { %s177_s28 = sshll.u32 %s1061_s27, 4  ;;  %s203_s6 = sshll.u32 %s1271_s3, 4  ;;  %s178_s28 = int_to_ptr.vmem [resolvable:$true] %s177_s28  ;;  %s204_s6 = int_to_ptr.hbm [resolvable:$true] %s203_s6 }
   0xb   : > { %p1126_p3 = pnand %p633_p0, %p164_p2  ;;  %s189_s10 = sshll.u32 %s1270_s2, 4  ;;  %s190_s10 = int_to_ptr.hbm [resolvable:$true] %s189_s10 }
   0xc   : > { %s1062_s11 = smov [#allocation8]   ;;  %s1063_s13 = smov 64  }
   0xd   : > { %p763_p4 = pneg %p1126_p3  ;;  %s205_s12 = sshll.u32 %s1062_s11, 4  ;;  %s206_s12 = int_to_ptr.vmem [resolvable:$true] %s205_s12 }
   0xe   : > { %s1064_s14 = smov 4   ;;  %s218_s17 = sshll.u32 %s1272_s4, 4  ;;  %s219_s17 = int_to_ptr.hbm [resolvable:$true] %s218_s17 }
   0xf   : > { %p1138_p6 = pnand %p763_p4, %p44_p1  ;;  %s1065_s22 = smov [#allocation7]  }
  0x10   : > { %s191_s23 = sshll.u32 %s1065_s22, 4  ;;  %s1158_s29 = sadd.s32 1, %s1059_s21   ;;  %s192_s23 = int_to_ptr.vmem [resolvable:$true] %s191_s23 }
  0x11   : > { %766 = dma.hbm_to_vmem [thread:$0]  (!%p1138_p6), %s176_s24, 256, %s178_s28, [#allocation6], %s1063_s13, %s1063_s13, %s1064_s14  }
  0x12   : > { %772 = dma.hbm_to_vmem [thread:$0]  (!%p1138_p6), %s204_s6, 1024, %s206_s12, [#allocation9], %s1063_s13, %s1063_s13, %s1064_s14  }
  0x13   : > { %769 = dma.hbm_to_vmem [thread:$0]  (!%p1138_p6), %s190_s10, 1024, %s192_s23, [#allocation6], %s1063_s13, %s1063_s13, %s1064_s14  }
  0x14   : > { %s1066_s24 = smov [#allocation10]   ;;  %s632_s28 = sadd.s32 4294967294, %s1059_s21  }
  0x15   : > { %s220_s27 = sshll.u32 %s1066_s24, 4  ;;  %s27_s30 = ssub.s32 %s1059_s21, %s1158_s29  ;;  %s221_s27 = int_to_ptr.vmem [resolvable:$true] %s220_s27 }
  0x16   : > { %775 = dma.hbm_to_vmem [thread:$0]  (!%p1138_p6), %s219_s17, 64, %s221_s27, [#allocation9]  }
  0x17   : > { %s30_s6 = sadd.s32 1, %s1055_s20  ;;  %p28_p7 = scmp.eq.s32.totalorder %s27_s30, 0 }
  0x18   : > { %p37_p8 = scmp.ne.s32.totalorder %s1055_s20, %s1051_s19  ;;  %p38_p9 = scmp.eq.s32.totalorder %s1059_s21, 0 }
  0x19   : > { %p43_p10 = scmp.ne.s32.totalorder %s1051_s19, %s1047_s18  ;;  %p151_p13 = scmp.eq.s32.totalorder %s1121_s25, 1 }
  0x1a   : > { %s1169_s8 = scalar_select %p28_p7, %s1055_s20, %s30_s6  }
  0x1b   : > { %p1171_p11 = por %p38_p9, %p37_p8  ;;  %p1177_p12 = por %p44_p1, %p43_p10 }
  0x1c   : > { %p157_p0 = scmp.eq.s32.totalorder %s632_s28, 1  ;;  %p788_p2 = scmp.lt.s32.totalorder %s1059_s21, 2 }
  0x1d   : > { %s231_s10 = sand.u32 1, %s1055_s20   ;;  %p1184_p4 = por %p151_p13, %p37_p8 }
  0x1e   : > { %p1188_p6 = por %p157_p0, %p43_p10  ;;  %s639_s13 = sshll.u32 %s231_s10, 3 }
  0x1f   : > { %s640_s14 = sshll.u32 %s1059_s21, 3  ;;  %s235_s22 = scalar_lea.vmem [#allocation2], %s639_s13 }
  0x20   : > { %s239_s17 = scalar_lea.hbm %s1268_s0, %s640_s14  ;;  %s243_s23 = sshll.u32 %s235_s22, 4  ;;  %s244_s23 = int_to_ptr.vmem [resolvable:$true] %s243_s23 }
  0x21   : > { %s241_s24 = sshll.u32 %s239_s17, 4  ;;  %p1198_p7 = pnand %p788_p2, %p1171_p11  ;;  %s242_s24 = int_to_ptr.hbm [resolvable:$true] %s241_s24 }
  0x22   : > { %s232_s28 = scalar_lea.sflag [#allocation3], %s231_s10  ;;  %s955_s30 = sshra.s32 %s242_s24, 4  ;;  %s956_s30 = int_to_ptr.hbm [resolvable:$true] %s955_s30 }
  0x23   : > { %s957_s6 = scalar_lea.hbm %s956_s30, 8  ;;  %p959_p9 = pneg %p1198_p7 }
  0x24   : > { %p958_p8 = scmp.ne.s32.totalorder %s956_s30, %s957_s6  ;;  %s962_s15 = scalar_lea.hbm %s1268_s0, 16 }
  0x25   : > { %p963_p11 = scmp.lt.s32.totalorder %s956_s30, %s1268_s0  ;;  %p964_p0 = scmp.lt.s32.totalorder %s962_s15, %s957_s6 }
  0x26   : > { %p960_p10 = pnand %p959_p9, %p958_p8 }
  0x27   : > { %p965_p2 = por %p964_p0, %p963_p11 }
  0x28   : > { %p961_p13 = pneg %p960_p10 }
  0x2a   : > { %p966_p5 = pnand %p965_p2, %p961_p13 }
  0x2c   : > { %969 = shalt.err (!%p966_p5)
}
  0x2d   : > { %779 = dma.hbm_to_vmem [thread:$0]  (!%p1198_p7), %s242_s24, 128, %s244_s23, %s232_s28  }
  0x2e   : > { %252 = sbr.rel (%p1126_p3) target bundleno = 468 (0x1d4), region = 40  ;;  %s1215_s10 = sand.u32 (!%p1126_p3), 1, %s1051_s19  }
  0x2f   : > { %s642_s17 = sshll.u32 (!%p1126_p3), %s1215_s10, 3  ;;  %s255_s22 = scalar_lea.sflag (!%p1126_p3), [#allocation3], %s1215_s10 }
  0x30   : > { %s258_s30 = scalar_lea.vmem (!%p1126_p3), [#allocation2], %s642_s17 }
  0x33   : > { %1030 = dma.done.wait (%p1177_p12), %s255_s22, 128  }
  0x34   : > { %1032 = vsyncadd (%p1177_p12), %s255_s22, 4294967168 }
  0x35   : > { %1034 = dma.done.wait (%p44_p1), [#allocation6], 1280  }
  0x36   : > { %1036 = vsyncadd (%p44_p1), [#allocation6], 4294966016 }
  0x37   : > { %1038 = dma.done.wait (%p44_p1), [#allocation9], 1088  }
  0x38   : > { %1040 = vsyncadd (%p44_p1), [#allocation9], 4294966208  ;;  %v726_v0 = vld [vmem:[#allocation5 + $0x8] sm:$0xff]  ;;  %v725_v2 = vld [vmem:[#allocation5] sm:$0xff]  ;;  %vm327_vm0 = vcmask 261120   ;;  %s722_s26 = sshll.u32 %s1121_s25, 3 }
  0x39   : > { %v734_v1 = vld [vmem:[#allocation7 + $0x38] sm:$0xff]  ;;  %337 = vmatpush.bf16.msra.mxu0 %v726_v0  ;;  %v307_v3 = vld [vmem:[%s258_s30] sm:$0xff]  ;;  %v733_v4 = vld [vmem:[#allocation7 + $0x30] sm:$0xff]  ;;  %s519_s24 = scalar_lea.hbm %s1273_s5, %s722_s26  ;;  %s305_s27 = scalar_lea.vmem [#allocation11], %s642_s17 }
  0x3a   : > { %412 = vmatpush.bf16.msra.mxu1 %v734_v1  ;;  %v308_v5 = vpack.c.bf16 %v307_v3, %v307_v3  ;;  %v732_v6 = vld [vmem:[#allocation7 + $0x28] sm:$0xff]  ;;  %v731_v7 = vld [vmem:[#allocation7 + $0x20] sm:$0xff]  ;;  %v730_v8 = vld [vmem:[#allocation7 + $0x18] sm:$0xff]  ;;  %s521_s28 = sshll.u32 %s305_s27, 4  ;;  %s523_s6 = sshll.u32 %s519_s24, 4  ;;  %s522_s28 = int_to_ptr.vmem [resolvable:$true] %s521_s28  ;;  %s524_s6 = int_to_ptr.hbm [resolvable:$true] %s523_s6 }
  0x3b   : > { %v729_v9 = vld [vmem:[#allocation7 + $0x10] sm:$0xff]  ;;  %v728_v10 = vld [vmem:[#allocation7 + $0x8] sm:$0xff]  ;;  %v727_v11 = vld [vmem:[#allocation7] sm:$0xff]  ;;  %s509_s13 = scalar_lea.sflag [#allocation4], %s1215_s10  ;;  %s999_s14 = sshra.s32 %s524_s6, 4  ;;  %s1000_s14 = int_to_ptr.hbm [resolvable:$true] %s999_s14 }
  0x3c   : > { %v742_v12 = vld [vmem:[#allocation8 + $0x38] sm:$0xff]  ;;  %v741_v13 = vld [vmem:[#allocation8 + $0x30] sm:$0xff]  ;;  %v740_v14 = vld [vmem:[#allocation8 + $0x28] sm:$0xff]  ;;  %s1001_s25 = scalar_lea.hbm %s1000_s14, 8  ;;  %s1005_s9 = scalar_lea.hbm %s1273_s5, 16 }
  0x3d   : > { %338 = vmatpush.bf16.msra.mxu0 %v725_v2  ;;  %493 = vmatpush.bf16.msra.mxu2 %v742_v12  ;;  %v739_v15 = vld [vmem:[#allocation8 + $0x20] sm:$0xff]  ;;  %v738_v16 = vld [vmem:[#allocation8 + $0x18] sm:$0xff]  ;;  %v737_v17 = vld [vmem:[#allocation8 + $0x10] sm:$0xff]  ;;  %p1002_p1 = scmp.ne.s32.totalorder %s1000_s14, %s1001_s25  ;;  %p1006_p12 = scmp.lt.s32.totalorder %s1000_s14, %s1273_s5 }
  0x3e   : > { %413 = vmatpush.bf16.msra.mxu1 %v733_v4  ;;  %v832_v18 = vld [vmem:[#allocation10] ss:$0 sm:$0xff]  ;;  %v736_v24 = vld [vmem:[#allocation8 + $0x8] sm:$0xff]  ;;  %v833_v26 = vld [vmem:[#allocation10 + $0x1] ss:$0 sm:$0xff]  ;;  %p1007_p7 = scmp.lt.s32.totalorder %s1005_s9, %s1001_s25 }
  0x3f   : > { %v735_v25 = vld [vmem:[#allocation8] sm:$0xff]  ;;  %p1003_p3 = pnand %p1002_p1, %p1184_p4 }
  0x40   : > { %656 = vmatmul.msk.bf16.vlgmr.msra.gmra.mxu0 %vm327_vm0, %v308_v5  ;;  %v834_v32 = vld [vmem:[#allocation10 + $0x2] ss:$0 sm:$0xff]  ;;  %p1008_p8 = por %p1007_p7, %p1006_p12 }
  0x41   : > { %494 = vmatpush.bf16.msra.mxu2 %v741_v13  ;;  %p1004_p5 = pneg %p1003_p3 }
  0x42   : > { %414 = vmatpush.bf16.msra.mxu1 %v732_v6 }
  0x43   : > { %p1009_p9 = pnand %p1008_p8, %p1004_p5 }
  0x45   : > { %495 = vmatpush.bf16.msra.mxu2 %v740_v14 }
  0x46   : > { %415 = vmatpush.bf16.msra.mxu1 %v731_v7 }
  0x49   : > { %496 = vmatpush.bf16.msra.mxu2 %v739_v15 }
  0x4a   : > { %416 = vmatpush.bf16.msra.mxu1 %v730_v8 }
  0x4d   : > { %497 = vmatpush.bf16.msra.mxu2 %v738_v16 }
  0x4e   : > { %417 = vmatpush.bf16.msra.mxu1 %v729_v9 }
  0x51   : > { %498 = vmatpush.bf16.msra.mxu2 %v737_v17 }
  0x52   : > { %418 = vmatpush.bf16.msra.mxu1 %v728_v10 }
  0x55   : > { %499 = vmatpush.bf16.msra.mxu2 %v736_v24 }
  0x56   : > { %419 = vmatpush.bf16.msra.mxu1 %v727_v11 }
  0x59   : > { %500 = vmatpush.bf16.msra.mxu2 %v735_v25 }
  0xbd   : > { %v340_v19 = vpop.f32.mrf.mxu0 }
  0xbe   : > { %v341_v20 = vadd.f32 %v832_v18, %v340_v19 }
  0xc0   : > { %v344_v21 = vmax.f32 %v341_v20, 0.0 }
  0xc2   : > { %v345_v22 = vpack.c.bf16 %v344_v21, %v344_v21 }
  0xc4   : > { %420 = vmatmul.bf16.vlgmr.msra.gmra.mxu1 %v345_v22 }
  0xc5   : > { %v342_v23 = vpop.f32.mrf.mxu0 }
 0x141   : > { %v421_v27 = vpop.f32.mrf.mxu1 }
 0x142   : > { %v422_v28 = vadd.f32 %v833_v26, %v421_v27 }
 0x144   : > { %v425_v29 = vmax.f32 %v422_v28, 0.0 }
 0x146   : > { %v426_v30 = vpack.c.bf16 %v425_v29, %v425_v29 }
 0x148   : > { %501 = vmatmul.bf16.vlgmr.msra.gmra.mxu2 %v426_v30 }
 0x149   : > { %v423_v31 = vpop.f32.mrf.mxu1 }
 0x1cb   : > { %v502_v33 = vpop.f32.mrf.mxu2 }
 0x1cc   : > { %v503_v34 = vadd.f32 %v834_v32, %v502_v33 }
 0x1ce   : > { %v506_v35 = vmax.f32 %v503_v34, 0.0 }
 0x1d0   : > { %507 = vst [vmem:[%s305_s27] sm:$0xff] %v506_v35 }
 0x1d1   : > { %1012 = shalt.err (!%p1009_p9)
}
 0x1d2   : > { %761 = dma.vmem_to_hbm [thread:$0]  (%p1184_p4), %s522_s28, 128, %s524_s6, %s509_s13  }
 0x1d3   : > { %v504_v36 = vpop.f32.mrf.mxu2 }
 0x1d4 PF: > { %s535_s10 = sand.u32 1, %s1047_s18   ;;  %p1281_p10 = scmp.ge.s32.totalorder %s1059_s21, 2 }
 0x1d5   : > { %s536_s30 = scalar_lea.sflag [#allocation4], %s535_s10 }
 0x1d6   : > { %p781_p13 = pnand %p1281_p10, %p1188_p6 }
 0x1d8   : > { %p782_p11 = pneg %p781_p13 }
 0x1da   : > { %1042 = dma.done.wait (%p782_p11), %s536_s30, 128  }
 0x1db   : > { %1044 = vsyncadd (%p782_p11), %s536_s30, 4294967168  ;;  %p20_p0 = scmp.ge.s32.totalorder %s1158_s29, 4   ;;  %s1282_s18 = smov %s1051_s19 }
 0x1dc   : > { %s1283_s19 = smov %s1055_s20  ;;  %s1284_s20 = smov %s1169_s8 }
 0x1dd   : > { %s1285_s21 = smov %s1158_s29  ;;  %22 = sbr.rel (!%p20_p0) target bundleno = 7 (0x7), region = 101 }
 0x1e2   :  { %542 = vsyncpa [#allocation3], 1 }
 0x1e3   :  { %544 = vsyncpa [#allocation3 + $0x1], 1 }
 0x1e4   :  { %545 = vsyncpa [#allocation6], 1 }
 0x1e5   :  { %546 = vsyncpa [#allocation9], 1 }
 0x1e6   :  { %547 = vsyncpa [#allocation4], 1 }
 0x1e7   :  { %549 = vsyncpa [#allocation4 + $0x1], 1 }

</bundles_post_ra>
